<compile_context>
chip_gen: v7x
topology: tpu7x:2x2x1
jax: 0.10.0
libtpu: 0.0.40
codegen_flags: <defaults>
</compile_context>

<pallas_src>
import functools

import jax
import jax.numpy as jnp
from jax.experimental import pallas as pl
from jax.experimental.pallas import tpu as pltpu

_BN_EPS = 1e-5     # torch.nn.BatchNorm2d default eps
_ALPHA = 0.9       # hard-coded alpha in BalancedBatchNorm.adapt
_COS_EPS = 1e-8    # torch.nn.functional.cosine_similarity default eps


def _cosine_sim(a, b):
    # torch's cosine_similarity clamps EACH norm to eps (differs from
    # dot / max(na*nb, eps) only when a stats vector has near-zero norm).
    dot = jnp.sum(a * b)
    na = jnp.maximum(jnp.sqrt(jnp.sum(a * a)), _COS_EPS)
    nb = jnp.maximum(jnp.sqrt(jnp.sum(b * b)), _COS_EPS)
    return dot / (na * nb)


def _prep_kernel(*refs, do_adapt, do_reset):
    """One-shot: adapted running stats + lane-expanded folded scale/shift."""
    if do_adapt:
        (x0_ref, rm_ref, rv_ref, gamma_ref, beta_ref,
         arm_ref, arv_ref, scale_ref, shift_ref) = refs
    else:
        (rm_ref, rv_ref, gamma_ref, beta_ref,
         arm_ref, arv_ref, scale_ref, shift_ref) = refs

    rm = rm_ref[...]          # (C, 1) running_mean (== original_weights[0] here)
    rv = rv_ref[...]          # (C, 1) running_var
    gamma = gamma_ref[...]    # (C, 1)
    beta = beta_ref[...]      # (C, 1)

    if do_adapt:
        # adapt(): stats of the FIRST sample only, reduced over spatial dims.
        x0 = x0_ref[...].astype(jnp.float32)                   # (C, HW)
        new_mean = jnp.mean(x0, axis=1, keepdims=True)         # (C, 1)
        new_var = jnp.mean((x0 - new_mean) ** 2, axis=1,
                           keepdims=True)                      # biased (unbiased=False)

        mean_sim = (1.0 + _cosine_sim(new_mean, rm)) * 0.5
        var_sim = (1.0 + _cosine_sim(new_var, rv)) * 0.5
        mbc = _ALPHA + (1.0 - _ALPHA) * (1.0 - mean_sim)       # scalar
        vbc = _ALPHA + (1.0 - _ALPHA) * (1.0 - var_sim)

        adapted_mean = mbc * rm + (1.0 - mbc) * new_mean       # (C, 1)
        adapted_var = vbc * rv + (1.0 - vbc) * new_var
    else:
        adapted_mean, adapted_var = rm, rv
    # TODO(synk): quantized input path (x.int_repr(), scale / zero_point) has
    # no Pallas equivalent here; only the float path is implemented.

    arm_ref[...] = adapted_mean
    arv_ref[...] = adapted_var

    # do_reset=True -> reset_weights() restores the original running stats
    # before batch_norm(x); otherwise BN uses the freshly adapted stats.
    if do_reset:
        use_mean, use_var = rm, rv
    else:
        use_mean, use_var = adapted_mean, adapted_var

    # Fold eval-mode BN into a single multiply-add: y = x*scale + shift.
    # Emit per-channel values expanded along the lane axis ((C, HW) -> wrapper
    # views as (1, C*HW)) so the streaming pass needs no per-row blocks.
    scale = gamma * jax.lax.rsqrt(use_var + _BN_EPS)            # (C, 1)
    shift = beta - use_mean * scale
    scale_ref[...] = jnp.broadcast_to(scale, scale_ref.shape)   # (C, HW)
    shift_ref[...] = jnp.broadcast_to(shift, shift_ref.shape)


def _scale_shift_kernel(x_ref, scale_ref, shift_ref, y_ref, *, compute_dtype):
    """Streaming elementwise y = x*scale + shift (per-lane scale/shift)."""
    x = x_ref[...].astype(compute_dtype)                        # (Rt, Lt)
    s = scale_ref[...].astype(compute_dtype)                    # (1, Lt)
    t = shift_ref[...].astype(compute_dtype)
    y_ref[...] = (x * s + t).astype(y_ref.dtype)


def _round_up(a, m):
    return -(-a // m) * m


def _vmem_config():
    """(vmem_limit_bytes, per-buffer tile budget) from the chip's VMEM size."""
    cap = None
    try:
        cap = getattr(pltpu.get_tpu_info(), "vmem_capacity_bytes", None)
    except Exception:
        cap = None
    if cap is not None and cap >= 100 * 1024 * 1024:
        # v5e / v6e: 128 MiB physical VMEM -> big slabs, few grid steps.
        return 96 * 1024 * 1024, 12 * 1024 * 1024
    # v7x (64 MiB VMEM) or unknown: keep 2xIN + 2xOUT well under the limit.
    return 48 * 1024 * 1024, 6 * 1024 * 1024


def _pick_tiles(rows, lanes, itemsize, budget_bytes):
    """Pick (row_tile, lane_tile) obeying (8,128)-or-full-extent blocking."""
    lt = lanes                                   # lane-dense by default
    row_bytes = max(1, lanes * itemsize)
    if rows <= 8:
        rt = rows                                # full-extent sublane block
    else:
        rt = max(8, (budget_bytes // row_bytes) // 8 * 8)
        rt = int(min(rt, _round_up(rows, 8)))
    if rt * lt * itemsize > budget_bytes and lanes > 128:
        lt = max(128, (budget_bytes // max(1, rt * itemsize)) // 128 * 128)
        lt = int(min(lt, _round_up(lanes, 128)))
    # Prefer >= 2 grid steps when possible so the "parallel" axes can split
    # across the two TensorCores (v7x megacore).
    if rows >= 16 and (-(-rows // rt)) * (-(-lanes // lt)) < 2:
        rt = max(8, _round_up(rows // 2, 8))
    return rt, lt


def balanced_batch_norm(x_nchw, running_mean, running_var, gamma, beta,
                        *, do_adapt=True, do_reset=True):
    n, c, h, w = x_nchw.shape
    hw = h * w
    rows = n
    lanes = c * hw
    f32 = jnp.float32

    # Free (metadata-only) views of the contiguous NCHW activation:
    x3 = x_nchw.reshape(n, c, hw)       # prep pass (sample 0 only, per-channel rows)
    x2 = x_nchw.reshape(rows, lanes)    # streaming: sublanes=N, lanes=C*H*W (lane-dense)

    rm = running_mean.reshape(c, 1).astype(f32)
    rv = running_var.reshape(c, 1).astype(f32)
    g = gamma.reshape(c, 1).astype(f32)
    b = beta.reshape(c, 1).astype(f32)

    # ---- one-shot prep: adapted stats + lane-expanded folded scale/shift ----
    vec_spec = pl.BlockSpec((c, 1), lambda i: (0, 0))
    lane_spec = pl.BlockSpec((c, hw), lambda i: (0, 0))
    prep_in_specs = [vec_spec, vec_spec, vec_spec, vec_spec]
    prep_args = [rm, rv, g, b]
    if do_adapt:
        # Only x[0] is DMA'd; leading (sample) dim squeezed away.
        prep_in_specs = [pl.BlockSpec((pl.Squeezed(), c, hw),
                                      lambda i: (0, 0, 0))] + prep_in_specs
        prep_args = [x3] + prep_args

    arm, arv, scale_chw, shift_chw = pl.pallas_call(
        functools.partial(_prep_kernel, do_adapt=do_adapt, do_reset=do_reset),
        grid=(1,),
        in_specs=prep_in_specs,
        out_specs=(vec_spec, vec_spec, lane_spec, lane_spec),
        out_shape=(jax.ShapeDtypeStruct((c, 1), f32),
                   jax.ShapeDtypeStruct((c, 1), f32),
                   jax.ShapeDtypeStruct((c, hw), f32),
                   jax.ShapeDtypeStruct((c, hw), f32)),
    )(*prep_args)

    # Contiguous metadata-only reshape: (C, HW) -> (1, C*HW) per-lane vectors
    # (replaces the old jnp.tile glue and (rt,1) sublane-padded blocks).
    scale_vec = scale_chw.reshape(1, lanes)
    shift_vec = shift_chw.reshape(1, lanes)

    # ---- streaming pass: lane-dense, auto-pipelined, megacore-parallel ------
    vmem_limit, tile_budget = _vmem_config()
    itemsize = jnp.dtype(x2.dtype).itemsize
    rt, lt = _pick_tiles(rows, lanes, itemsize, tile_budget)
    grid = (-(-rows // rt), -(-lanes // lt))

    # bf16 activations: compute natively in bf16 (v6e/v7x VPU); else f32.
    compute_dtype = jnp.bfloat16 if x2.dtype == jnp.bfloat16 else jnp.float32

    y2 = pl.pallas_call(
        functools.partial(_scale_shift_kernel, compute_dtype=compute_dtype),
        grid=grid,
        in_specs=[pl.BlockSpec((rt, lt), lambda i, j: (i, j)),
                  pl.BlockSpec((1, lt), lambda i, j: (0, j)),
                  pl.BlockSpec((1, lt), lambda i, j: (0, j))],
        out_specs=pl.BlockSpec((rt, lt), lambda i, j: (i, j)),
        out_shape=jax.ShapeDtypeStruct((rows, lanes), x2.dtype),
        compiler_params=pltpu.CompilerParams(
            dimension_semantics=("parallel", "parallel"),
            vmem_limit_bytes=vmem_limit),
        cost_estimate=pl.CostEstimate(
            flops=2 * rows * lanes,
            transcendentals=0,
            bytes_accessed=2 * rows * lanes * itemsize + 2 * lanes * 4),
    )(x2, scale_vec, shift_vec)

    return y2.reshape(n, c, h, w), arm.reshape(c), arv.reshape(c)


if __name__ == "__main__":
    key = jax.random.PRNGKey(0)
    kx, km, kv, kg, kb = jax.random.split(key, 5)
    N, C, H, W = 2, 4, 16, 16
    x = jax.random.normal(kx, (N, C, H, W), dtype=jnp.float32)
    # Deterministic, non-trivial BatchNorm2d parameters / buffers.
    running_mean = 0.1 * jax.random.normal(km, (C,), dtype=jnp.float32)
    running_var = 1.0 + 0.1 * jax.random.uniform(kv, (C,), dtype=jnp.float32)
    gamma = 1.0 + 0.1 * jax.random.normal(kg, (C,), dtype=jnp.float32)
    beta = 0.1 * jax.random.normal(kb, (C,), dtype=jnp.float32)

    y, arm, arv = balanced_batch_norm(x, running_mean, running_var, gamma, beta)
    (y, arm, arv) = jax.block_until_ready((y, arm, arv))

    # Pure-JAX reference of the module's forward (defaults: adapt + reset).
    x0 = x[0]
    new_mean = x0.mean(axis=(1, 2))
    new_var = ((x0 - new_mean[:, None, None]) ** 2).mean(axis=(1, 2))

    def _cos(a, b):
        na = jnp.maximum(jnp.linalg.norm(a), _COS_EPS)
        nb = jnp.maximum(jnp.linalg.norm(b), _COS_EPS)
        return jnp.dot(a, b) / (na * nb)

    mbc = _ALPHA + (1 - _ALPHA) * (1.0 - (1.0 + _cos(new_mean, running_mean)) / 2.0)
    vbc = _ALPHA + (1 - _ALPHA) * (1.0 - (1.0 + _cos(new_var, running_var)) / 2.0)
    ref_arm = mbc * running_mean + (1.0 - mbc) * new_mean
    ref_arv = vbc * running_var + (1.0 - vbc) * new_var
    # do_reset=True -> BN applied with the ORIGINAL running statistics.
    ref_y = (x - running_mean[None, :, None, None]) * (
        gamma[None, :, None, None]
        / jnp.sqrt(running_var[None, :, None, None] + _BN_EPS)
    ) + beta[None, :, None, None]

    assert jnp.allclose(y, ref_y, atol=1e-5, rtol=1e-5), "BN output mismatch"
    assert jnp.allclose(arm, ref_arm, atol=1e-5, rtol=1e-5), "adapted mean mismatch"
    assert jnp.allclose(arv, ref_arv, atol=1e-5, rtol=1e-5), "adapted var mismatch"
    print("KERNEL_OK")
</pallas_src>

<mosaic_0001>
module attributes {stable_mosaic.version = 11 : i64} {
  func.func @_prep_kernel(%arg0: i32, %arg1: memref<1x4x256xf32, #tpu.memory_space<vmem>>, %arg2: memref<4x1xf32, #tpu.memory_space<vmem>>, %arg3: memref<4x1xf32, #tpu.memory_space<vmem>>, %arg4: memref<4x1xf32, #tpu.memory_space<vmem>>, %arg5: memref<4x1xf32, #tpu.memory_space<vmem>>, %arg6: memref<4x1xf32, #tpu.memory_space<vmem>>, %arg7: memref<4x1xf32, #tpu.memory_space<vmem>>, %arg8: memref<4x256xf32, #tpu.memory_space<vmem>>, %arg9: memref<4x256xf32, #tpu.memory_space<vmem>>) attributes {dimension_semantics = [#tpu.dimension_semantics<arbitrary>], iteration_bounds = array<i64: 1>, scalar_prefetch = 0 : i64, scratch_operands = 0 : i64, tpu.core_type = #tpu.core_type<tc>, window_params = [{transform_indices = @transform_0, window_bounds = array<i64: 1, 4, 256>}, {pipeline_mode = #tpu.pipeline_mode<synchronous>, transform_indices = @transform_1, window_bounds = array<i64: 4, 1>}, {pipeline_mode = #tpu.pipeline_mode<synchronous>, transform_indices = @transform_2, window_bounds = array<i64: 4, 1>}, {pipeline_mode = #tpu.pipeline_mode<synchronous>, transform_indices = @transform_3, window_bounds = array<i64: 4, 1>}, {pipeline_mode = #tpu.pipeline_mode<synchronous>, transform_indices = @transform_4, window_bounds = array<i64: 4, 1>}, {pipeline_mode = #tpu.pipeline_mode<synchronous>, transform_indices = @transform_5, window_bounds = array<i64: 4, 1>}, {pipeline_mode = #tpu.pipeline_mode<synchronous>, transform_indices = @transform_6, window_bounds = array<i64: 4, 1>}, {pipeline_mode = #tpu.pipeline_mode<synchronous>, transform_indices = @transform_7, window_bounds = array<i64: 4, 256>}, {pipeline_mode = #tpu.pipeline_mode<synchronous>, transform_indices = @transform_8, window_bounds = array<i64: 4, 256>}]} {
    %c0 = arith.constant 0 : index
    %c0_0 = arith.constant 0 : index
    %0 = vector.load %arg2[%c0, %c0_0] : memref<4x1xf32, #tpu.memory_space<vmem>>, vector<4x1xf32>
    %c0_1 = arith.constant 0 : index
    %c0_2 = arith.constant 0 : index
    %1 = vector.load %arg3[%c0_1, %c0_2] : memref<4x1xf32, #tpu.memory_space<vmem>>, vector<4x1xf32>
    %c0_3 = arith.constant 0 : index
    %c0_4 = arith.constant 0 : index
    %2 = vector.load %arg4[%c0_3, %c0_4] : memref<4x1xf32, #tpu.memory_space<vmem>>, vector<4x1xf32>
    %c0_5 = arith.constant 0 : index
    %c0_6 = arith.constant 0 : index
    %3 = vector.load %arg5[%c0_5, %c0_6] : memref<4x1xf32, #tpu.memory_space<vmem>>, vector<4x1xf32>
    %c0_7 = arith.constant 0 : index
    %c0_8 = arith.constant 0 : index
    %c0_9 = arith.constant 0 : index
    %4 = vector.load %arg1[%c0_7, %c0_8, %c0_9] : memref<1x4x256xf32, #tpu.memory_space<vmem>>, vector<1x4x256xf32>
    %5 = vector.shape_cast %4 : vector<1x4x256xf32> to vector<4x256xf32>
    %cst = arith.constant dense<0.000000e+00> : vector<4xf32>
    %6 = vector.multi_reduction <add>, %5, %cst [1] : vector<4x256xf32> to vector<4xf32>
    %7 = vector.shape_cast %6 : vector<4xf32> to vector<4x1xf32>
    %cst_10 = arith.constant 2.560000e+02 : f32
    %8 = vector.broadcast %cst_10 : f32 to vector<4x1xf32>
    %9 = arith.divf %7, %8 : vector<4x1xf32>
    %10 = vector.broadcast %9 : vector<4x1xf32> to vector<4x256xf32>
    %11 = arith.subf %5, %10 : vector<4x256xf32>
    %12 = arith.mulf %11, %11 : vector<4x256xf32>
    %cst_11 = arith.constant dense<0.000000e+00> : vector<4xf32>
    %13 = vector.multi_reduction <add>, %12, %cst_11 [1] : vector<4x256xf32> to vector<4xf32>
    %14 = vector.shape_cast %13 : vector<4xf32> to vector<4x1xf32>
    %cst_12 = arith.constant 2.560000e+02 : f32
    %15 = vector.broadcast %cst_12 : f32 to vector<4x1xf32>
    %16 = arith.divf %14, %15 : vector<4x1xf32>
    %17 = arith.mulf %9, %0 : vector<4x1xf32>
    %18 = vector.shape_cast %17 : vector<4x1xf32> to vector<1x4x1xf32>
    %cst_13 = arith.constant dense<0.000000e+00> : vector<1xf32>
    %19 = vector.multi_reduction <add>, %18, %cst_13 [1, 2] : vector<1x4x1xf32> to vector<1xf32>
    %20 = vector.shape_cast %19 : vector<1xf32> to vector<1x1x1xf32>
    %21 = vector.extract %20[0, 0, 0] : f32 from vector<1x1x1xf32>
    %22 = arith.mulf %9, %9 : vector<4x1xf32>
    %23 = vector.shape_cast %22 : vector<4x1xf32> to vector<1x4x1xf32>
    %cst_14 = arith.constant dense<0.000000e+00> : vector<1xf32>
    %24 = vector.multi_reduction <add>, %23, %cst_14 [1, 2] : vector<1x4x1xf32> to vector<1xf32>
    %25 = vector.shape_cast %24 : vector<1xf32> to vector<1x1x1xf32>
    %26 = vector.extract %25[0, 0, 0] : f32 from vector<1x1x1xf32>
    %27 = math.sqrt %26 : f32
    %cst_15 = arith.constant 9.99999993E-9 : f32
    %28 = arith.maximumf %27, %cst_15 : f32
    %29 = arith.mulf %0, %0 : vector<4x1xf32>
    %30 = vector.shape_cast %29 : vector<4x1xf32> to vector<1x4x1xf32>
    %cst_16 = arith.constant dense<0.000000e+00> : vector<1xf32>
    %31 = vector.multi_reduction <add>, %30, %cst_16 [1, 2] : vector<1x4x1xf32> to vector<1xf32>
    %32 = vector.shape_cast %31 : vector<1xf32> to vector<1x1x1xf32>
    %33 = vector.extract %32[0, 0, 0] : f32 from vector<1x1x1xf32>
    %34 = math.sqrt %33 : f32
    %cst_17 = arith.constant 9.99999993E-9 : f32
    %35 = arith.maximumf %34, %cst_17 : f32
    %36 = arith.mulf %28, %35 : f32
    %37 = arith.divf %21, %36 : f32
    %cst_18 = arith.constant 1.000000e+00 : f32
    %38 = arith.addf %cst_18, %37 : f32
    %cst_19 = arith.constant 5.000000e-01 : f32
    %39 = arith.mulf %38, %cst_19 : f32
    %40 = arith.mulf %16, %1 : vector<4x1xf32>
    %41 = vector.shape_cast %40 : vector<4x1xf32> to vector<1x4x1xf32>
    %cst_20 = arith.constant dense<0.000000e+00> : vector<1xf32>
    %42 = vector.multi_reduction <add>, %41, %cst_20 [1, 2] : vector<1x4x1xf32> to vector<1xf32>
    %43 = vector.shape_cast %42 : vector<1xf32> to vector<1x1x1xf32>
    %44 = vector.extract %43[0, 0, 0] : f32 from vector<1x1x1xf32>
    %45 = arith.mulf %16, %16 : vector<4x1xf32>
    %46 = vector.shape_cast %45 : vector<4x1xf32> to vector<1x4x1xf32>
    %cst_21 = arith.constant dense<0.000000e+00> : vector<1xf32>
    %47 = vector.multi_reduction <add>, %46, %cst_21 [1, 2] : vector<1x4x1xf32> to vector<1xf32>
    %48 = vector.shape_cast %47 : vector<1xf32> to vector<1x1x1xf32>
    %49 = vector.extract %48[0, 0, 0] : f32 from vector<1x1x1xf32>
    %50 = math.sqrt %49 : f32
    %cst_22 = arith.constant 9.99999993E-9 : f32
    %51 = arith.maximumf %50, %cst_22 : f32
    %52 = arith.mulf %1, %1 : vector<4x1xf32>
    %53 = vector.shape_cast %52 : vector<4x1xf32> to vector<1x4x1xf32>
    %cst_23 = arith.constant dense<0.000000e+00> : vector<1xf32>
    %54 = vector.multi_reduction <add>, %53, %cst_23 [1, 2] : vector<1x4x1xf32> to vector<1xf32>
    %55 = vector.shape_cast %54 : vector<1xf32> to vector<1x1x1xf32>
    %56 = vector.extract %55[0, 0, 0] : f32 from vector<1x1x1xf32>
    %57 = math.sqrt %56 : f32
    %cst_24 = arith.constant 9.99999993E-9 : f32
    %58 = arith.maximumf %57, %cst_24 : f32
    %59 = arith.mulf %51, %58 : f32
    %60 = arith.divf %44, %59 : f32
    %cst_25 = arith.constant 1.000000e+00 : f32
    %61 = arith.addf %cst_25, %60 : f32
    %cst_26 = arith.constant 5.000000e-01 : f32
    %62 = arith.mulf %61, %cst_26 : f32
    %cst_27 = arith.constant 1.000000e+00 : f32
    %63 = arith.subf %cst_27, %39 : f32
    %cst_28 = arith.constant 1.000000e-01 : f32
    %64 = arith.mulf %cst_28, %63 : f32
    %cst_29 = arith.constant 0.899999976 : f32
    %65 = arith.addf %cst_29, %64 : f32
    %cst_30 = arith.constant 1.000000e+00 : f32
    %66 = arith.subf %cst_30, %62 : f32
    %cst_31 = arith.constant 1.000000e-01 : f32
    %67 = arith.mulf %cst_31, %66 : f32
    %cst_32 = arith.constant 0.899999976 : f32
    %68 = arith.addf %cst_32, %67 : f32
    %69 = vector.broadcast %65 : f32 to vector<4x1xf32>
    %70 = arith.mulf %69, %0 : vector<4x1xf32>
    %cst_33 = arith.constant 1.000000e+00 : f32
    %71 = arith.subf %cst_33, %65 : f32
    %72 = vector.broadcast %71 : f32 to vector<4x1xf32>
    %73 = arith.mulf %72, %9 : vector<4x1xf32>
    %74 = arith.addf %70, %73 : vector<4x1xf32>
    %75 = vector.broadcast %68 : f32 to vector<4x1xf32>
    %76 = arith.mulf %75, %1 : vector<4x1xf32>
    %cst_34 = arith.constant 1.000000e+00 : f32
    %77 = arith.subf %cst_34, %68 : f32
    %78 = vector.broadcast %77 : f32 to vector<4x1xf32>
    %79 = arith.mulf %78, %16 : vector<4x1xf32>
    %80 = arith.addf %76, %79 : vector<4x1xf32>
    %c0_35 = arith.constant 0 : index
    %c0_36 = arith.constant 0 : index
    %81 = vector.load %arg6[%c0_35, %c0_36] : memref<4x1xf32, #tpu.memory_space<vmem>>, vector<4x1xf32>
    tpu.vector_store %arg6[%c0_35, %c0_36], %74 {strides = array<i32>} : memref<4x1xf32, #tpu.memory_space<vmem>>, vector<4x1xf32>,
    %c0_37 = arith.constant 0 : index
    %c0_38 = arith.constant 0 : index
    %82 = vector.load %arg7[%c0_37, %c0_38] : memref<4x1xf32, #tpu.memory_space<vmem>>, vector<4x1xf32>
    tpu.vector_store %arg7[%c0_37, %c0_38], %80 {strides = array<i32>} : memref<4x1xf32, #tpu.memory_space<vmem>>, vector<4x1xf32>,
    %cst_39 = arith.constant 9.99999974E-6 : f32
    %83 = vector.broadcast %cst_39 : f32 to vector<4x1xf32>
    %84 = arith.addf %1, %83 : vector<4x1xf32>
    %85 = math.rsqrt %84 : vector<4x1xf32>
    %86 = arith.mulf %2, %85 : vector<4x1xf32>
    %87 = arith.mulf %0, %86 : vector<4x1xf32>
    %88 = arith.subf %3, %87 : vector<4x1xf32>
    %89 = vector.shape_cast %86 : vector<4x1xf32> to vector<4x1xf32>
    %90 = vector.broadcast %89 : vector<4x1xf32> to vector<4x256xf32>
    %c0_40 = arith.constant 0 : index
    %c0_41 = arith.constant 0 : index
    %91 = vector.load %arg8[%c0_40, %c0_41] : memref<4x256xf32, #tpu.memory_space<vmem>>, vector<4x256xf32>
    tpu.vector_store %arg8[%c0_40, %c0_41], %90 {strides = array<i32>} : memref<4x256xf32, #tpu.memory_space<vmem>>, vector<4x256xf32>,
    %92 = vector.shape_cast %88 : vector<4x1xf32> to vector<4x1xf32>
    %93 = vector.broadcast %92 : vector<4x1xf32> to vector<4x256xf32>
    %c0_42 = arith.constant 0 : index
    %c0_43 = arith.constant 0 : index
    %94 = vector.load %arg9[%c0_42, %c0_43] : memref<4x256xf32, #tpu.memory_space<vmem>>, vector<4x256xf32>
    tpu.vector_store %arg9[%c0_42, %c0_43], %93 {strides = array<i32>} : memref<4x256xf32, #tpu.memory_space<vmem>>, vector<4x256xf32>,
    return
  }
  func.func @transform_0(%arg0: i32) -> (i32, i32, i32) {
    %c0_i32 = arith.constant 0 : i32
    %c0_i32_0 = arith.constant 0 : i32
    %c0_i32_1 = arith.constant 0 : i32
    %c0_i32_2 = arith.constant 0 : i32
    return %c0_i32, %c0_i32_0, %c0_i32_1 : i32, i32, i32
  }
  func.func @transform_1(%arg0: i32) -> (i32, i32) {
    %c0_i32 = arith.constant 0 : i32
    %c0_i32_0 = arith.constant 0 : i32
    %c0_i32_1 = arith.constant 0 : i32
    return %c0_i32, %c0_i32_0 : i32, i32
  }
  func.func @transform_2(%arg0: i32) -> (i32, i32) {
    %c0_i32 = arith.constant 0 : i32
    %c0_i32_0 = arith.constant 0 : i32
    %c0_i32_1 = arith.constant 0 : i32
    return %c0_i32, %c0_i32_0 : i32, i32
  }
  func.func @transform_3(%arg0: i32) -> (i32, i32) {
    %c0_i32 = arith.constant 0 : i32
    %c0_i32_0 = arith.constant 0 : i32
    %c0_i32_1 = arith.constant 0 : i32
    return %c0_i32, %c0_i32_0 : i32, i32
  }
  func.func @transform_4(%arg0: i32) -> (i32, i32) {
    %c0_i32 = arith.constant 0 : i32
    %c0_i32_0 = arith.constant 0 : i32
    %c0_i32_1 = arith.constant 0 : i32
    return %c0_i32, %c0_i32_0 : i32, i32
  }
  func.func @transform_5(%arg0: i32) -> (i32, i32) {
    %c0_i32 = arith.constant 0 : i32
    %c0_i32_0 = arith.constant 0 : i32
    %c0_i32_1 = arith.constant 0 : i32
    return %c0_i32, %c0_i32_0 : i32, i32
  }
  func.func @transform_6(%arg0: i32) -> (i32, i32) {
    %c0_i32 = arith.constant 0 : i32
    %c0_i32_0 = arith.constant 0 : i32
    %c0_i32_1 = arith.constant 0 : i32
    return %c0_i32, %c0_i32_0 : i32, i32
  }
  func.func @transform_7(%arg0: i32) -> (i32, i32) {
    %c0_i32 = arith.constant 0 : i32
    %c0_i32_0 = arith.constant 0 : i32
    %c0_i32_1 = arith.constant 0 : i32
    return %c0_i32, %c0_i32_0 : i32, i32
  }
  func.func @transform_8(%arg0: i32) -> (i32, i32) {
    %c0_i32 = arith.constant 0 : i32
    %c0_i32_0 = arith.constant 0 : i32
    %c0_i32_1 = arith.constant 0 : i32
    return %c0_i32, %c0_i32_0 : i32, i32
  }
}

</mosaic_0001>

<bundles_post_ra>
// kernel: tpu_custom_call.1
= control target key start
LH: loop header
LB: loop body
LE: loop exit
PB: predicated region body
PF: predicated region fallthrough
CT: control target
= control target key end

     0   :  { %14 = vsyncpa [#allocation3], 0  ;;  %vm34_vm0 = vcmask 1043456   ;;  %s516_s0 = inlined_call_operand.vmem [shape: f32[2,4,256], index: 0, kind: input, shape index: {}]   ;;  %s517_s1 = inlined_call_operand.vmem [shape: f32[4,1], index: 1, kind: input, shape index: {}]   ;;  %s518_s2 = inlined_call_operand.vmem [shape: f32[4,1], index: 2, kind: input, shape index: {}]   ;;  %s519_s3 = inlined_call_operand.vmem [shape: f32[4,1], index: 3, kind: input, shape index: {}]   ;;  %s520_s4 = inlined_call_operand.vmem [shape: f32[4,1], index: 4, kind: input, shape index: {}]   ;;  %s521_s5 = inlined_call_operand.vmem [shape: f32[4,1], index: 5, kind: output, shape index: {0}]   ;;  %s522_s6 = inlined_call_operand.vmem [shape: f32[4,1], index: 6, kind: output, shape index: {1}]   ;;  %s523_s7 = inlined_call_operand.hbm [shape: f32[4,256], index: 7, kind: output, shape index: {2}]   ;;  %s524_s8 = inlined_call_operand.hbm [shape: f32[4,256], index: 8, kind: output, shape index: {3}]  }
   0x1   :  { %v30_v0 = vld [vmem:[%s516_s0] sm:$0xff] }
   0x2   :  { %15 = vsyncpa [#allocation5], 0  ;;  %v32_v1 = vcombine.high %v30_v0, %v30_v0  ;;  %v35_v2 = vsel %vm34_vm0, %v30_v0, 0.0  ;;  %v364_v5 = vmov 839922192   ;;  %v46_v7 = vlaneseq }
   0x3   :  { %v44_v6 = vunpack.c.l.s4 %v364_v5  ;;  %v424_v12 = vld [vmem:[%s517_s1] sm:$0xf]  ;;  %vm63_vm1 = vcmask 3072   ;;  %s365_s13 = smov 1e-08  }
   0x4   :  { %v36_v3 = vsel %vm34_vm0, %v32_v1, 0.0  ;;  %v47_v9 = vshrl.u32 %v46_v7, 7  ;;  %v95_v17 = vmul.f32 %v424_v12, %v424_v12  ;;  %v444_v38 = vld [vmem:[%s518_s2] sm:$0xf] }
   0x5   :  { %v37_v4 = vadd.f32 %v36_v3, %v35_v2  ;;  %v45_v8 = vunpack.c.0.s8 %v44_v6  ;;  %v155_v42 = vmul.f32 %v444_v38, %v444_v38 }
   0x6   :  { %v96_v22 = vsel %vm63_vm1, %v95_v17, 0.0 }
   0x7   :  { %38 = vadd.xlane.f32.xlu0 %v37_v4  ;;  %v419_v10 = vsub.s32 %v45_v8, %v47_v9  ;;  %v156_v49 = vsel %vm63_vm1, %v155_v42, 0.0 }
  0x94   :  { %v39_v11 = vpop.xlane.xlu0 %38 }
  0x95   :  { %v426_v13 = vmul.f32 0.00390625, %v39_v11 }
  0x97   :  { %v74_v14 = vmul.f32 %v426_v13, %v426_v13  ;;  %v62_v15 = vmul.f32 %v426_v13, %v424_v12  ;;  %v49_v16 = vrot.slane %v426_v13, %v419_v10 }
  0x99   :  { %v75_v18 = vsel %vm63_vm1, %v74_v14, 0.0  ;;  %v64_v19 = vsel %vm63_vm1, %v62_v15, 0.0  ;;  %v51_v20 = vsub.f32 %v30_v0, %v49_v16  ;;  %v203_v14 = vadd.f32 1e-05, %v444_v38 }
  0x9a   :  { %76 = vadd.xlane.f32.xlu1 %v75_v18  ;;  %65 = vadd.xlane.f32.xlu0 %v64_v19 }
  0x9b   :  { %v52_v21 = vmul.f32 %v51_v20, %v51_v20 }
  0x9d   :  { %v54_v23 = vcombine.high %v52_v21, %v52_v21  ;;  %v56_v24 = vsel %vm34_vm0, %v52_v21, 0.0 }
  0x9e   :  { %97 = vadd.xlane.f32.xlu1 %v96_v22 }
  0x9f   :  { %v57_v25 = vsel %vm34_vm0, %v54_v23, 0.0 }
  0xa0   :  { %v58_v26 = vadd.f32 %v57_v25, %v56_v24 }
  0xa2   :  { %59 = vadd.xlane.f32.xlu0 %v58_v26  ;;  %v28_v26 = vld [vmem:[%s519_s3] sm:$0xf] }
 0x127   :  { %v77_v27 = vpop.xlane.xlu1 %76  ;;  %v66_v28 = vpop.xlane.xlu0 %65 }
 0x128   :  { %v78_v29 = vrot.slane %v77_v27, 4  ;;  %v67_v30 = vrot.slane %v66_v28, 4 }
 0x12a   :  { %v79_v31 = vadd.f32 %v78_v29, %v77_v27  ;;  %v68_v32 = vadd.f32 %v67_v30, %v66_v28  ;;  %v29_v29 = vld [vmem:[%s520_s4] sm:$0xf]  ;;  %v366_v30 = vmov 0  }
 0x12b   :  { %v98_v50 = vpop.xlane.xlu1 %97  ;;  %300 = vset.pattern.permute.xlu1 %v366_v30  ;;  %299 = vset.pattern.permute.xlu0 %v366_v30 }
 0x12c   :  { %v80_v33 = vrot.slane %v79_v31, 2  ;;  %v69_v34 = vrot.slane %v68_v32, 2  ;;  %v99_v51 = vrot.slane %v98_v50, 4 }
 0x12e   :  { %v70_v35 = vadd.f32 %v69_v34, %v68_v32  ;;  %v81_v36 = vadd.f32 %v80_v33, %v79_v31  ;;  %v100_v52 = vadd.f32 %v99_v51, %v98_v50 }
 0x12f   :  { %v60_v37 = vpop.xlane.xlu0 %59 }
 0x130   :  { %v446_v39 = vmul.f32 0.00390625, %v60_v37  ;;  %v71_v40 = vrot.slane %v70_v35, 1  ;;  %v82_v41 = vrot.slane %v81_v36, 1  ;;  %v101_v54 = vrot.slane %v100_v52, 2 }
 0x132   :  { %v72_v43 = vadd.f32 %v71_v40, %v70_v35  ;;  %v83_v44 = vadd.f32 %v82_v41, %v81_v36  ;;  %v134_v45 = vmul.f32 %v446_v39, %v446_v39  ;;  %v123_v46 = vmul.f32 %v446_v39, %v444_v38 }
 0x133   :  { %v102_v55 = vadd.f32 %v101_v54, %v100_v52 }
 0x134   :  { %270 = vpush %v72_v43  ;;  %v135_v47 = vsel %vm63_vm1, %v134_v45, 0.0  ;;  %v124_v48 = vsel %vm63_vm1, %v123_v46, 0.0 }
 0x135   :  { %272 = vpush %v83_v44  ;;  %136 = vadd.xlane.f32.xlu0 %v135_v47  ;;  %125 = vadd.xlane.f32.xlu1 %v124_v48  ;;  %v103_v57 = vrot.slane %v102_v55, 1 }
 0x137   :  { %v104_v62 = vadd.f32 %v103_v57, %v102_v55 }
 0x139   :  { %157 = vadd.xlane.f32.xlu1 %v156_v49 }
 0x165   :  { %s457_s2 = spop %270 }
 0x166   :  { %s273_s9 = spop %272 }
 0x167   :  { %v85_v53 = vstv %s273_s9  ;;  %s368_s9 = smov [#allocation4]  }
 0x168   :  { %302 = vrsqrt.f32 %v85_v53  ;;  %vm88_vm2 = vcmp.eq.f32.partialorder %v85_v53, inf  ;;  %v91_v59 = vand.u32 2147483648, %v85_v53  ;;  %vm90_vm3 = vcmp.eq.f32.partialorder %v85_v53, 0.0 }
 0x172   :  { %v303_v56 = vpop.eup %302 }
 0x173   :  { %v87_v58 = vmul.f32 %v303_v56, %v85_v53 }
 0x175   :  { %v89_v60 = vsel %vm88_vm2, %v85_v53, %v87_v58 }
 0x176   :  { %v92_v61 = vsel %vm90_vm3, %v91_v59, %v89_v60 }
 0x177   :  { %274 = vpush %v92_v61 }
 0x178   :  { %276 = vpush %v104_v62 }
 0x1a8   :  { %s275_s10 = spop %274 }
 0x1a9   :  { %s277_s11 = spop %276  ;;  %s94_s14 = smax.f32 %s365_s13, %s275_s10 }
 0x1aa   :  { %v106_v63 = vstv %s277_s11  ;;  %s254_s10 = sshll.u32 %s368_s9, 4  ;;  %s255_s10 = int_to_ptr.vmem [resolvable:$true] %s254_s10 }
 0x1ab   :  { %304 = vrsqrt.f32 %v106_v63  ;;  %vm109_vm4 = vcmp.eq.f32.partialorder %v106_v63, inf  ;;  %v112_v2 = vand.u32 2147483648, %v106_v63  ;;  %vm111_vm5 = vcmp.eq.f32.partialorder %v106_v63, 0.0 }
 0x1b5   :  { %v305_v0 = vpop.eup %304 }
 0x1b6   :  { %v108_v1 = vmul.f32 %v305_v0, %v106_v63 }
 0x1b8   :  { %v110_v3 = vsel %vm109_vm4, %v106_v63, %v108_v1 }
 0x1b9   :  { %v113_v4 = vsel %vm111_vm5, %v112_v2, %v110_v3 }
 0x1ba   :  { %278 = vpush %v113_v4 }
 0x1c2   :  { %v126_v5 = vpop.xlane.xlu1 %125  ;;  %v137_v6 = vpop.xlane.xlu0 %136 }
 0x1c3   :  { %v127_v7 = vrot.slane %v126_v5, 4  ;;  %v138_v8 = vrot.slane %v137_v6, 4 }
 0x1c5   :  { %v128_v9 = vadd.f32 %v127_v7, %v126_v5  ;;  %v139_v11 = vadd.f32 %v138_v8, %v137_v6 }
 0x1c6   :  { %v158_v32 = vpop.xlane.xlu1 %157 }
 0x1c7   :  { %v129_v15 = vrot.slane %v128_v9, 2  ;;  %v140_v16 = vrot.slane %v139_v11, 2  ;;  %v159_v33 = vrot.slane %v158_v32, 4 }
 0x1c9   :  { %v130_v18 = vadd.f32 %v129_v15, %v128_v9  ;;  %v141_v19 = vadd.f32 %v140_v16, %v139_v11  ;;  %v160_v34 = vadd.f32 %v159_v33, %v158_v32 }
 0x1cb   :  { %v131_v20 = vrot.slane %v130_v18, 1  ;;  %v142_v21 = vrot.slane %v141_v19, 1  ;;  %v161_v36 = vrot.slane %v160_v34, 2 }
 0x1cd   :  { %v132_v23 = vadd.f32 %v131_v20, %v130_v18  ;;  %v143_v24 = vadd.f32 %v142_v21, %v141_v19  ;;  %v162_v37 = vadd.f32 %v161_v36, %v160_v34 }
 0x1cf   :  { %v163_v42 = vrot.slane %v162_v37, 1 }
 0x1d1   :  { %v164_v51 = vadd.f32 %v163_v42, %v162_v37 }
 0x1eb   :  { %s279_s12 = spop %278 }
 0x1ec   :  { %s115_s15 = smax.f32 %s365_s13, %s279_s12 }
 0x1ed   :  { %s116_s16 = smul.f32 %s115_s15, %s94_s14 }
 0x1ef   :  { %v117_v17 = vstv %s116_s16 }
 0x1f0   :  { %306 = vrcp.f32 %v117_v17 }
 0x1f1   :  { %308 = vrsqrt.f32 %v203_v14 }
 0x1fa   :  { %v307_v22 = vpop.eup %306 }
 0x1fb   :  { %280 = vpush %v307_v22  ;;  %v309_v25 = vpop.eup %308 }
 0x1fc   :  { %282 = vpush %v132_v23  ;;  %v205_v27 = vmul.f32 %v309_v25, %v28_v26 }
 0x1fd   :  { %284 = vpush %v143_v24 }
 0x1fe   :  { %v206_v28 = vmul.f32 %v205_v27, %v424_v12  ;;  %210 = vperm.xlu0 %299, %v205_v27  }
 0x200   :  { %v207_v31 = vsub.f32 %v29_v29, %v206_v28 }
 0x202   :  { %223 = vperm.xlu1 %300, %v207_v31  }
 0x22c   :  { %s281_s21 = spop %280 }
 0x22d   :  { %s120_s22 = smul.f32 %s281_s21, %s457_s2  ;;  %s470_s23 = spop %282 }
 0x22e   :  { %s285_s3 = spop %284 }
 0x22f   :  { %s121_s24 = sadd.f32 1.0, %s120_s22  ;;  %v145_v35 = vstv %s285_s3 }
 0x230   :  { %310 = vrsqrt.f32 %v145_v35  ;;  %vm148_vm6 = vcmp.eq.f32.partialorder %v145_v35, inf  ;;  %v151_v47 = vand.u32 2147483648, %v145_v35  ;;  %vm150_vm7 = vcmp.eq.f32.partialorder %v145_v35, 0.0 }
 0x231   :  { %s122_s25 = smul.f32 0.5, %s121_s24 }
 0x233   :  { %s183_s4 = ssub.f32 1.0, %s122_s25 }
 0x235   :  { %s184_s26 = smul.f32 0.1, %s183_s4 }
 0x237   :  { %s185_s27 = sadd.f32 0.9, %s184_s26 }
 0x239   :  { %v189_v40 = vstv %s185_s27  ;;  %s191_s28 = ssub.f32 1.0, %s185_s27 }
 0x23a   :  { %v311_v41 = vpop.eup %310  ;;  %v190_v45 = vmul.f32 %v189_v40, %v424_v12 }
 0x23b   :  { %v192_v43 = vstv %s191_s28  ;;  %v147_v44 = vmul.f32 %v311_v41, %v145_v35 }
 0x23c   :  { %v193_v46 = vmul.f32 %v192_v43, %v426_v13 }
 0x23d   :  { %v149_v48 = vsel %vm148_vm6, %v145_v35, %v147_v44 }
 0x23e   :  { %v194_v49 = vadd.f32 %v193_v46, %v190_v45  ;;  %v152_v50 = vsel %vm150_vm7, %v151_v47, %v149_v48 }
 0x23f   :  { %286 = vpush %v152_v50 }
 0x240   :  { %201 = vst.msk [vmem:[%s521_s5] sm:$0xf] %vm63_vm1, %v194_v49  ;;  %s367_s5 = smov [#allocation2]  }
 0x241   :  { %288 = vpush %v164_v51  ;;  %s244_s2 = sshll.u32 %s367_s5, 4  ;;  %s245_s2 = int_to_ptr.vmem [resolvable:$true] %s244_s2 }
 0x242   :  { %s316_s11 = scalar_lea.vmem %s245_s2, 128  ;;  %p321_p1 = scmp.lt.s32.totalorder %s245_s2, %s245_s2 }
 0x243   :  { %p317_p0 = scmp.ne.s32.totalorder %s245_s2, %s316_s11  ;;  %p322_p2 = scmp.lt.s32.totalorder %s316_s11, %s316_s11 }
 0x245   :  { %p323_p3 = por %p322_p2, %p321_p1 }
 0x247   :  { %p324_p4 = pnand %p323_p3, %p317_p0 }
 0x270   :  { %s478_s0 = spop %286 }
 0x272   :  { %s289_s1 = spop %288 }
 0x273   :  { %v166_v12 = vstv %s289_s1 }
 0x274   :  { %312 = vrsqrt.f32 %v166_v12  ;;  %vm169_vm8 = vcmp.eq.f32.partialorder %v166_v12, inf  ;;  %v172_v53 = vand.u32 2147483648, %v166_v12  ;;  %vm171_vm9 = vcmp.eq.f32.partialorder %v166_v12, 0.0 }
 0x27d   :  { %v211_v56 = vpop.permute.xlu0 %210 }
 0x27e   :  { %v313_v13 = vpop.eup %312  ;;  %v218_v58 = vrot.slane %v211_v56, %v419_v10 }
 0x27f   :  { %v168_v52 = vmul.f32 %v313_v13, %v166_v12 }
 0x280   :  { %220 = vst [vmem:[#allocation2] sm:$0xff] %v218_v58 }
 0x281   :  { %v170_v54 = vsel %vm169_vm8, %v166_v12, %v168_v52  ;;  %v224_v57 = vpop.permute.xlu1 %223 }
 0x282   :  { %v173_v55 = vsel %vm171_vm9, %v172_v53, %v170_v54  ;;  %v231_v59 = vrot.slane %v224_v57, %v419_v10 }
 0x283   :  { %290 = vpush %v173_v55 }
 0x284   :  { %233 = vst [vmem:[#allocation4] sm:$0xff] %v231_v59 }
 0x285   :  { %327 = shalt.err (!%p324_p4)
}
 0x286   :  { %s328_s15 = scalar_lea.hbm %s523_s7, 128 }
 0x287   :  { %p329_p5 = scmp.ne.s32.totalorder %s523_s7, %s328_s15  ;;  %p332_p6 = scmp.lt.u32.totalorder %s328_s15, %s523_s7 }
 0x289   :  { %p334_p7 = pnand %p332_p6, %p329_p5 }
 0x28b   :  { %337 = shalt.err (!%p334_p7)
}
 0x28c   :  { %247 = dma.vmem_to_hbm [thread:$0]  %s245_s2, 128, %s523_s7, [#allocation3]  }
 0x28d   :  { %s338_s22 = scalar_lea.vmem %s255_s10, 128  ;;  %p343_p9 = scmp.lt.s32.totalorder %s255_s10, %s255_s10 }
 0x28e   :  { %p339_p8 = scmp.ne.s32.totalorder %s255_s10, %s338_s22  ;;  %p344_p10 = scmp.lt.s32.totalorder %s338_s22, %s338_s22 }
 0x290   :  { %p345_p11 = por %p344_p10, %p343_p9 }
 0x292   :  { %p346_p12 = pnand %p345_p11, %p339_p8 }
 0x294   :  { %349 = shalt.err (!%p346_p12)
}
 0x295   :  { %s350_s25 = scalar_lea.hbm %s524_s8, 128 }
 0x296   :  { %p351_p13 = scmp.ne.s32.totalorder %s524_s8, %s350_s25  ;;  %p354_p0 = scmp.lt.u32.totalorder %s350_s25, %s524_s8 }
 0x298   :  { %p356_p1 = pnand %p354_p0, %p351_p13 }
 0x29a   :  { %359 = shalt.err (!%p356_p1)
}
 0x29b   :  { %257 = dma.vmem_to_hbm [thread:$0]  %s255_s10, 128, %s524_s8, [#allocation5]  }
 0x29c   :  { %s154_s1 = smax.f32 %s365_s13, %s478_s0 }
 0x2b4   :  { %s291_s30 = spop %290 }
 0x2b5   :  { %s175_s5 = smax.f32 %s365_s13, %s291_s30 }
 0x2b6   :  { %s176_s2 = smul.f32 %s175_s5, %s154_s1 }
 0x2b8   :  { %v177_v10 = vstv %s176_s2 }
 0x2b9   :  { %314 = vrcp.f32 %v177_v10 }
 0x2c3   :  { %v315_v60 = vpop.eup %314 }
 0x2c4   :  { %292 = vpush %v315_v60 }
 0x2f5   :  { %s293_s9 = spop %292 }
 0x2f6   :  { %s180_s11 = smul.f32 %s293_s9, %s470_s23 }
 0x2f8   :  { %s181_s12 = sadd.f32 1.0, %s180_s11 }
 0x2fa   :  { %s182_s14 = smul.f32 0.5, %s181_s12 }
 0x2fc   :  { %s186_s15 = ssub.f32 1.0, %s182_s14 }
 0x2fe   :  { %s187_s16 = smul.f32 0.1, %s186_s15 }
 0x300   :  { %s188_s17 = sadd.f32 0.9, %s187_s16 }
 0x302   :  { %v195_v61 = vstv %s188_s17  ;;  %s197_s18 = ssub.f32 1.0, %s188_s17 }
 0x303   :  { %v196_v63 = vmul.f32 %v195_v61, %v444_v38 }
 0x304   :  { %v198_v62 = vstv %s197_s18 }
 0x305   :  { %v199_v0 = vmul.f32 %v198_v62, %v446_v39 }
 0x307   :  { %v200_v1 = vadd.f32 %v199_v0, %v196_v63 }
 0x309   :  { %202 = vst.msk [vmem:[%s522_s6] sm:$0xf] %vm63_vm1, %v200_v1 }
 0x30a   :  { %360 = dma.done.wait [#allocation3], 128  }
 0x30b   :  { %361 = vsyncadd [#allocation3], 4294967168 }
 0x30c   :  { %362 = dma.done.wait [#allocation5], 128  }
 0x30d   :  { %363 = vsyncadd [#allocation5], 4294967168 }
 0x30e   :  { %268 = vsyncpa [#allocation3], 1 }
 0x30f   :  { %269 = vsyncpa [#allocation5], 1 }

</bundles_post_ra>
